<compile_context>
chip_gen: v7x
topology: tpu7x:2x2x1
jax: 0.10.0
libtpu: 0.0.40
codegen_flags: <defaults>
</compile_context>

<pallas_src>
import jax
import jax.numpy as jnp
import numpy as np
from jax.experimental import pallas as pl
from jax.experimental.pallas import tpu as pltpu

# ---- small synthetic config (mirrors the module's __init__ shapes) ----
VOCAB = 32            # rows of the (synthetic) pretrained embedding matrix W
EMBED = 32            # embedding dim (W.size()[1])
SEQ = 16              # sequence length
BATCH = 2
NUM_FILTERS = 8       # config.num_filters
FILTER_SIZES = (2, 3, 4)  # config.filter_sizes = "2,3,4"
NUM_CLASSES = 4       # config.num_classes
FC_HIDDEN = 256       # fixed in the module: nn.Linear(num_filters*len(filter_sizes), 256)

MAX_K = max(FILTER_SIZES)                      # 4  -> K = MAX_K*EMBED = 128 (one lane width)
CONV_OUT = NUM_FILTERS * len(FILTER_SIZES)     # 24 packed conv output columns


def textcnn_kernel(win_ref, wconv_ref, bconv_ref, valid_ref,
                   fcw_ref, fcb_ref, ow_ref, ob_ref, out_ref):
    B = out_ref.shape[0]
    L = win_ref.shape[0] // B

    # --- ONE fused MXU matmul for every (batch row, position, filter size) ---
    # [B*L, MAX_K*E] @ [MAX_K*E, 3F]   (bf16 operands, f32 accumulation)
    conv = jnp.dot(win_ref[...], wconv_ref[...],
                   preferred_element_type=jnp.float32)            # [B*L, 3F] f32
    conv = conv + bconv_ref[...]                                  # packed bias [1, 3F]
    conv = conv.reshape(B, L, CONV_OUT)                           # [B, L, 3F]

    # Mask tail positions whose window overlaps the zero padding (per filter group).
    pos = jax.lax.broadcasted_iota(jnp.int32, conv.shape, 1)      # position t along seq
    valid = pos < valid_ref[...][None]                            # [B, L, 3F]
    conv = jnp.where(valid, conv, -jnp.inf)

    act = jnp.maximum(conv, 0.0)                                  # F.relu
    feat = jnp.max(act, axis=1)                                   # max_pool1d over full length -> [B, 3F]

    # dropout is identity at inference (eval mode)
    h = jnp.dot(feat.astype(jnp.bfloat16), fcw_ref[...],
                preferred_element_type=jnp.float32) + fcb_ref[...]
    h = jnp.maximum(h, 0.0)
    logits = jnp.dot(h.astype(jnp.bfloat16), ow_ref[...],
                     preferred_element_type=jnp.float32) + ob_ref[...]
    out_ref[...] = pl.reciprocal(1.0 + jnp.exp(-logits), approx=False)   # sigmoid (EUP exp + recip)


def _pack_conv_params(params):
    """Pack per-filter-size Conv2d weights/biases into one lane-dense matmul operand."""
    wcols, bcols, vlens = [], [], []
    for k in FILTER_SIZES:
        w = params[f"conv{k}_w"]                                       # [k*E, F], (k,E)-major
        wcols.append(jnp.pad(w, ((0, (MAX_K - k) * EMBED), (0, 0))))   # zero rows for k < MAX_K
        bcols.append(params[f"conv{k}_b"])                             # [1, F]
        vlens.append(np.full((NUM_FILTERS,), SEQ - k + 1, np.int32))   # valid positions per column
    wconv = jnp.concatenate(wcols, axis=-1).astype(jnp.bfloat16)       # [MAX_K*E, 3F]
    bconv = jnp.concatenate(bcols, axis=-1).astype(jnp.float32)        # [1, 3F]
    valid = jnp.asarray(np.concatenate(vlens)[None, :])                # [1, 3F] int32
    return wconv, bconv, valid


def textcnn_forward(tokens, params):
    B, L = tokens.shape
    # glue: embedding lookup (gather) in plain JAX
    emb = jnp.take(params["embedding"], tokens, axis=0).astype(jnp.float32)      # [B, L, E]

    # single unfold in plain JAX (layout plumbing, not compute): zero-pad by MAX_K-1 and
    # build the lane-dense window matrix [B*L, MAX_K*E] = [B*L, 128]
    emb_pad = jnp.pad(emb, ((0, 0), (0, MAX_K - 1), (0, 0)))
    win = jnp.concatenate([emb_pad[:, j:j + L, :] for j in range(MAX_K)], axis=-1)  # [B, L, MAX_K*E]
    win = win.reshape(B * L, MAX_K * EMBED).astype(jnp.bfloat16)

    wconv, bconv, valid = _pack_conv_params(params)

    args = [win, wconv, bconv, valid,
            params["fc_w"].astype(jnp.bfloat16), params["fc_b"],
            params["out_w"].astype(jnp.bfloat16), params["out_b"]]

    # Grid-less at this toy size (single VMEM-resident call).  For realistic shapes,
    # tile the batch axis with a BlockSpec grid + dimension_semantics=("parallel",).
    return pl.pallas_call(
        textcnn_kernel,
        out_shape=jax.ShapeDtypeStruct((B, NUM_CLASSES), jnp.float32),
        in_specs=[pl.BlockSpec(memory_space=pltpu.MemorySpace.VMEM)] * len(args),
        out_specs=pl.BlockSpec(memory_space=pltpu.MemorySpace.VMEM),
    )(*args)


def init_params(key):
    ks = jax.random.split(key, 16)
    params = {}
    # synthetic "pretrained" embedding W (row 0 is the padding row)
    params["embedding"] = 0.1 * jax.random.normal(ks[0], (VOCAB, EMBED), jnp.float32)
    # conv kernels: PyTorch Conv2d weight [F, 1, k, E] flattened (k, E)-major -> [k*E, F]
    for i, k in enumerate(FILTER_SIZES):
        params[f"conv{k}_w"] = 0.1 * jax.random.normal(ks[1 + i], (k * EMBED, NUM_FILTERS), jnp.float32)
        params[f"conv{k}_b"] = 0.01 * jax.random.normal(ks[5 + i], (1, NUM_FILTERS), jnp.float32)
    in_feat = NUM_FILTERS * len(FILTER_SIZES)
    params["fc_w"] = 0.1 * jax.random.normal(ks[9], (in_feat, FC_HIDDEN), jnp.float32)
    params["fc_b"] = 0.01 * jax.random.normal(ks[10], (1, FC_HIDDEN), jnp.float32)
    params["out_w"] = 0.1 * jax.random.normal(ks[11], (FC_HIDDEN, NUM_CLASSES), jnp.float32)
    params["out_b"] = 0.01 * jax.random.normal(ks[12], (1, NUM_CLASSES), jnp.float32)
    return params


def reference_forward(tokens, params):
    # pure-JAX f32 reference of the PyTorch forward (eval mode)
    emb = jnp.take(params["embedding"], tokens, axis=0)
    pooled = []
    for k in FILTER_SIZES:
        T = SEQ - k + 1
        win = jnp.concatenate([emb[:, j:j + T, :] for j in range(k)], axis=-1)
        conv = jnp.einsum("btd,df->btf", win, params[f"conv{k}_w"]) + params[f"conv{k}_b"][None]
        pooled.append(jnp.max(jnp.maximum(conv, 0.0), axis=1))
    feat = jnp.concatenate(pooled, axis=-1)
    h = jnp.maximum(feat @ params["fc_w"] + params["fc_b"], 0.0)
    logits = h @ params["out_w"] + params["out_b"]
    return 1.0 / (1.0 + jnp.exp(-logits))


if __name__ == "__main__":
    key = jax.random.PRNGKey(0)
    k_tok, k_par = jax.random.split(key)
    tokens = jax.random.randint(k_tok, (BATCH, SEQ), 0, VOCAB, dtype=jnp.int32)
    params = init_params(k_par)

    out = jax.block_until_ready(textcnn_forward(tokens, params))
    ref = jax.block_until_ready(reference_forward(tokens, params))

    assert out.shape == (BATCH, NUM_CLASSES), out.shape
    # tolerance loosened (vs. 1e-5) because MXU operands are fed as bf16 per perf review
    assert jnp.allclose(out, ref, atol=2e-2, rtol=2e-2), (out, ref)
    print("KERNEL_OK")
</pallas_src>

<mosaic_0001>
module attributes {stable_mosaic.version = 11 : i64} {
  func.func @textcnn_kernel(%arg0: memref<32x128xbf16, #tpu.memory_space<vmem>>, %arg1: memref<128x24xbf16, #tpu.memory_space<vmem>>, %arg2: memref<1x24xf32, #tpu.memory_space<vmem>>, %arg3: memref<1x24xi32, #tpu.memory_space<vmem>>, %arg4: memref<24x256xbf16, #tpu.memory_space<vmem>>, %arg5: memref<1x256xf32, #tpu.memory_space<vmem>>, %arg6: memref<256x4xbf16, #tpu.memory_space<vmem>>, %arg7: memref<1x4xf32, #tpu.memory_space<vmem>>, %arg8: memref<2x4xf32, #tpu.memory_space<vmem>>) attributes {dimension_semantics = [], scalar_prefetch = 0 : i64, scratch_operands = 0 : i64, tpu.core_type = #tpu.core_type<tc>} {
    %c0 = arith.constant 0 : index
    %c0_0 = arith.constant 0 : index
    %0 = vector.load %arg0[%c0, %c0_0] : memref<32x128xbf16, #tpu.memory_space<vmem>>, vector<32x128xbf16>
    %c0_1 = arith.constant 0 : index
    %c0_2 = arith.constant 0 : index
    %1 = vector.load %arg1[%c0_1, %c0_2] : memref<128x24xbf16, #tpu.memory_space<vmem>>, vector<128x24xbf16>
    %cst = arith.constant dense<0.000000e+00> : vector<32x24xf32>
    %2 = tpu.matmul %0, %1, %cst {dimension_numbers = #tpu.dot_dimension_numbers<[1], [0], [0], [1], [0, 0, 1, 1], [], []>} : vector<32x128xbf16>, vector<128x24xbf16>, vector<32x24xf32> -> vector<32x24xf32>
    %c0_3 = arith.constant 0 : index
    %c0_4 = arith.constant 0 : index
    %3 = vector.load %arg2[%c0_3, %c0_4] : memref<1x24xf32, #tpu.memory_space<vmem>>, vector<1x24xf32>
    %4 = vector.broadcast %3 : vector<1x24xf32> to vector<32x24xf32>
    %5 = arith.addf %2, %4 : vector<32x24xf32>
    %6 = vector.shape_cast %5 : vector<32x24xf32> to vector<2x16x24xf32>
    %7 = tpu.iota {dimensions = array<i32: 1>} : vector<2x16x24xi32>
    %c0_5 = arith.constant 0 : index
    %c0_6 = arith.constant 0 : index
    %8 = vector.load %arg3[%c0_5, %c0_6] : memref<1x24xi32, #tpu.memory_space<vmem>>, vector<1x24xi32>
    %9 = vector.shape_cast %8 : vector<1x24xi32> to vector<1x1x24xi32>
    %10 = vector.broadcast %9 : vector<1x1x24xi32> to vector<2x16x24xi32>
    %11 = arith.cmpi slt, %7, %10 : vector<2x16x24xi32>
    %cst_7 = arith.constant 0xFF800000 : f32
    %12 = vector.broadcast %cst_7 : f32 to vector<2x16x24xf32>
    %13 = arith.select %11, %6, %12 : vector<2x16x24xi1>, vector<2x16x24xf32>
    %cst_8 = arith.constant 0.000000e+00 : f32
    %14 = vector.broadcast %cst_8 : f32 to vector<2x16x24xf32>
    %15 = arith.maximumf %13, %14 : vector<2x16x24xf32>
    %cst_9 = arith.constant dense<0xFF800000> : vector<2x24xf32>
    %16 = vector.multi_reduction <maximumf>, %15, %cst_9 [1] : vector<2x16x24xf32> to vector<2x24xf32>
    %17 = arith.truncf %16 : vector<2x24xf32> to vector<2x24xbf16>
    %c0_10 = arith.constant 0 : index
    %c0_11 = arith.constant 0 : index
    %18 = vector.load %arg4[%c0_10, %c0_11] : memref<24x256xbf16, #tpu.memory_space<vmem>>, vector<24x256xbf16>
    %cst_12 = arith.constant dense<0.000000e+00> : vector<2x256xf32>
    %19 = tpu.matmul %17, %18, %cst_12 {dimension_numbers = #tpu.dot_dimension_numbers<[1], [0], [0], [1], [0, 0, 1, 1], [], []>} : vector<2x24xbf16>, vector<24x256xbf16>, vector<2x256xf32> -> vector<2x256xf32>
    %c0_13 = arith.constant 0 : index
    %c0_14 = arith.constant 0 : index
    %20 = vector.load %arg5[%c0_13, %c0_14] : memref<1x256xf32, #tpu.memory_space<vmem>>, vector<1x256xf32>
    %21 = vector.broadcast %20 : vector<1x256xf32> to vector<2x256xf32>
    %22 = arith.addf %19, %21 : vector<2x256xf32>
    %cst_15 = arith.constant 0.000000e+00 : f32
    %23 = vector.broadcast %cst_15 : f32 to vector<2x256xf32>
    %24 = arith.maximumf %22, %23 : vector<2x256xf32>
    %25 = arith.truncf %24 : vector<2x256xf32> to vector<2x256xbf16>
    %c0_16 = arith.constant 0 : index
    %c0_17 = arith.constant 0 : index
    %26 = vector.load %arg6[%c0_16, %c0_17] : memref<256x4xbf16, #tpu.memory_space<vmem>>, vector<256x4xbf16>
    %cst_18 = arith.constant dense<0.000000e+00> : vector<2x4xf32>
    %27 = tpu.matmul %25, %26, %cst_18 {dimension_numbers = #tpu.dot_dimension_numbers<[1], [0], [0], [1], [0, 0, 1, 1], [], []>} : vector<2x256xbf16>, vector<256x4xbf16>, vector<2x4xf32> -> vector<2x4xf32>
    %c0_19 = arith.constant 0 : index
    %c0_20 = arith.constant 0 : index
    %28 = vector.load %arg7[%c0_19, %c0_20] : memref<1x4xf32, #tpu.memory_space<vmem>>, vector<1x4xf32>
    %29 = vector.broadcast %28 : vector<1x4xf32> to vector<2x4xf32>
    %30 = arith.addf %27, %29 : vector<2x4xf32>
    %cst_21 = arith.constant 0.000000e+00 : f32
    %31 = vector.broadcast %cst_21 : f32 to vector<2x4xf32>
    %32 = arith.subf %31, %30 : vector<2x4xf32>
    %33 = math.exp %32 : vector<2x4xf32>
    %cst_22 = arith.constant 1.000000e+00 : f32
    %34 = vector.broadcast %cst_22 : f32 to vector<2x4xf32>
    %35 = arith.addf %34, %33 : vector<2x4xf32>
    %36 = tpu.reciprocal %35 : vector<2x4xf32> -> vector<2x4xf32>
    %c0_23 = arith.constant 0 : index
    %c0_24 = arith.constant 0 : index
    %37 = vector.load %arg8[%c0_23, %c0_24] : memref<2x4xf32, #tpu.memory_space<vmem>>, vector<2x4xf32>
    tpu.vector_store %arg8[%c0_23, %c0_24], %36 {strides = array<i32>} : memref<2x4xf32, #tpu.memory_space<vmem>>, vector<2x4xf32>,
    return
  }
}

</mosaic_0001>

<bundles_post_ra>
// kernel: tpu_custom_call.1
= control target key start
LH: loop header
LB: loop body
LE: loop exit
PB: predicated region body
PF: predicated region fallthrough
CT: control target
= control target key end

     0   :  { %s811_s0 = inlined_call_operand.vmem [shape: bf16[32,128], index: 0, kind: input, shape index: {}]   ;;  %s812_s1 = inlined_call_operand.vmem [shape: bf16[128,24], index: 1, kind: input, shape index: {}]   ;;  %s813_s2 = inlined_call_operand.vmem [shape: f32[1,24], index: 2, kind: input, shape index: {}]   ;;  %s814_s3 = inlined_call_operand.vmem [shape: s32[1,24], index: 3, kind: input, shape index: {}]   ;;  %s815_s4 = inlined_call_operand.vmem [shape: bf16[24,256], index: 4, kind: input, shape index: {}]   ;;  %s816_s5 = inlined_call_operand.vmem [shape: f32[1,256], index: 5, kind: input, shape index: {}]   ;;  %s817_s6 = inlined_call_operand.vmem [shape: bf16[256,4], index: 6, kind: input, shape index: {}]   ;;  %s818_s7 = inlined_call_operand.vmem [shape: f32[1,4], index: 7, kind: input, shape index: {}]   ;;  %s819_s8 = inlined_call_operand.hbm [shape: f32[2,4], index: 8, kind: output, shape index: {}]  }
   0x1   :  { %v583_v0 = vld [vmem:[%s812_s1] sm:$0xff]   ;;  %v584_v1 = vld [vmem:[%s812_s1 + $0x8] sm:$0xff]   ;;  %v585_v2 = vld [vmem:[%s812_s1 + $0x10] sm:$0xff]  }
   0x2   :  { %561 = vmatprep.subr.bf16.mxu0 %v583_v0  ;;  %v586_v3 = vld [vmem:[%s812_s1 + $0x18] sm:$0xff]   ;;  %v591_v4 = vld [vmem:[%s811_s0] sm:$0xff]   ;;  %v588_v6 = vld [vmem:[%s812_s1 + $0x28] sm:$0xff]  }
   0x3   :  { %562 = vmatpush3.bf16.msra.mxu0 %v583_v0  ;;  %v587_v5 = vld [vmem:[%s812_s1 + $0x20] sm:$0xff]   ;;  %577 = vmatprep.mubr.bf16.mxu0 %v591_v4  ;;  %v589_v7 = vld [vmem:[%s812_s1 + $0x30] sm:$0xff]  }
   0x4   :  { %563 = vmatprep.subr.bf16.mxu0 %v584_v1 }
   0x7   :  { %564 = vmatpush3.bf16.msra.mxu0 %v584_v1 }
   0x8   :  { %565 = vmatprep.subr.bf16.mxu0 %v585_v2 }
   0xb   :  { %566 = vmatpush3.bf16.msra.mxu0 %v585_v2 }
   0xc   :  { %567 = vmatprep.subr.bf16.mxu0 %v586_v3 }
   0xf   :  { %568 = vmatpush3.bf16.msra.mxu0 %v586_v3 }
  0x10   :  { %569 = vmatprep.subr.bf16.mxu0 %v587_v5 }
  0x13   :  { %570 = vmatpush3.bf16.msra.mxu0 %v587_v5 }
  0x14   :  { %571 = vmatprep.subr.bf16.mxu0 %v588_v6 }
  0x15   :  { %13 = vsyncpa [#allocation3], 0  ;;  %v590_v8 = vld [vmem:[%s812_s1 + $0x38] sm:$0xff]   ;;  %v592_v9 = vld [vmem:[%s811_s0 + $0x8] sm:$0xff]   ;;  %vm246_vm0 = vcmask 1043456   ;;  %v642_v15 = vmov 0   ;;  %v167_v18 = vlaneseq }
  0x16   :  { %v593_v10 = vld [vmem:[%s815_s4 + $0x4] ss:$8 sps:$4 sm:$0xff]   ;;  %v595_v11 = vld [vmem:[%s815_s4] ss:$8 sps:$4 sm:$0xff]   ;;  %v208_v12 = vld [vmem:[%s815_s4 + $0x10] sm:$0xff]  ;;  %285 = vmatprep.mubr.bf16.mxu1 %v642_v15  ;;  %vm185_vm3 = vcmask 195584  }
  0x17   :  { %572 = vmatpush3.bf16.msra.mxu0 %v588_v6  ;;  %253 = vmatprep.subr.bf16.mxu1 %v593_v10  ;;  %v509_v13 = vcombine.high %v208_v12, %v208_v12  ;;  %v508_v14 = vcombine.low %v208_v12, %v208_v12  ;;  %v598_v17 = vld [vmem:[%s817_s6 + $0x40] sm:$0xff]   ;;  %v731_v19 = vshrl.u32 %v167_v18, 7  ;;  %vm225_vm4 = vcmask 1041409   ;;  %v600_v0 = vld [vmem:[%s817_s6 + $0x48] sm:$0xff]   ;;  %v602_v2 = vld [vmem:[%s817_s6 + $0x50] sm:$0xff]  }
  0x18   :  { %573 = vmatprep.subr.bf16.mxu0 %v589_v7  ;;  %254 = vmatpush1.bf16.msra.mxu1 %v595_v11  ;;  %v505_v20 = vld [vmem:[%s814_s3] ss:$0 sm:$0xff]  ;;  %v601_v1 = vld [vmem:[%s817_s6 + $0x8] sm:$0xff]   ;;  %v603_v3 = vld [vmem:[%s817_s6 + $0x10] sm:$0xff]   ;;  %vm478_vm5 = vcmask 25600  }
  0x19   :  { %510 = vmatprep.subr.msk.bf16.mxu1 %vm246_vm0, %v509_v13  ;;  %v248_v16 = vsel %vm246_vm0, %v508_v14, 0  ;;  %v494_v21 = vld [vmem:[%s813_s2] ss:$0 sm:$0xff]  ;;  %v169_v22 = vadd.s32 8, %v731_v19  ;;  %vm175_vm1 = vcmp.lt.s32.totalorder %v731_v19, %v505_v20  ;;  %v604_v4 = vld [vmem:[%s817_s6 + $0x58] sm:$0xff]   ;;  %v610_v10 = vld [vmem:[%s817_s6 + $0x70] sm:$0xff]  }
  0x1a   :  { %v599_v62 = vld [vmem:[%s817_s6] sm:$0xff]   ;;  %v605_v5 = vld [vmem:[%s817_s6 + $0x18] sm:$0xff]   ;;  %v611_v11 = vld [vmem:[%s817_s6 + $0x30] sm:$0xff]   ;;  %v213_v14 = vsub.s32 0, %v731_v19 }
  0x1b   :  { %574 = vmatpush3.bf16.msra.mxu0 %v589_v7  ;;  %vm176_vm2 = vcmp.lt.s32.totalorder %v169_v22, %v505_v20  ;;  %v606_v6 = vld [vmem:[%s817_s6 + $0x60] sm:$0xff]   ;;  %v612_v12 = vld [vmem:[%s817_s6 + $0x78] sm:$0xff]  }
  0x1c   :  { %575 = vmatprep.subr.bf16.mxu0 %v590_v8  ;;  %256 = vmatpush1.bf16.msra.mxu1 %v248_v16  ;;  %v607_v7 = vld [vmem:[%s817_s6 + $0x20] sm:$0xff]   ;;  %v613_v13 = vld [vmem:[%s817_s6 + $0x38] sm:$0xff]   ;;  %v217_v16 = vsub.s32 1, %v731_v19 }
  0x1d   :  { %539 = vmatprep.subr.bf16.mxu1 %v598_v17  ;;  %v209_v15 = vld [vmem:[%s816_s5] sm:$0x3]  ;;  %s643_s5 = smov [#allocation2]  }
  0x1e   :  { %v214_v17 = vrot.slane %v209_v15, %v213_v14  ;;  %v218_v18 = vrot.slane %v209_v15, %v217_v16  ;;  %s486_s16 = sshll.u32 %s643_s5, 4  ;;  %s487_s16 = int_to_ptr.vmem [resolvable:$true] %s486_s16 }
  0x1f   :  { %576 = vmatpush3.bf16.msra.mxu0 %v590_v8  ;;  %v608_v8 = vld [vmem:[%s817_s6 + $0x68] sm:$0xff]   ;;  %s618_s17 = scalar_lea.vmem %s487_s16, 32  ;;  %p623_p1 = scmp.lt.s32.totalorder %s487_s16, %s487_s16 }
  0x20   :  { %p619_p0 = scmp.ne.s32.totalorder %s487_s16, %s618_s17  ;;  %p624_p2 = scmp.lt.s32.totalorder %s618_s17, %s618_s17 }
  0x22   :  { %578 = vmatmul.mubr.bf16.vlgmr.msra.gmra.mrb[0].mxu0 %v592_v9  ;;  %v609_v9 = vld [vmem:[%s817_s6 + $0x28] sm:$0xff]   ;;  %p625_p3 = por %p624_p2, %p623_p1 }
  0x24   :  { %p626_p4 = pnand %p625_p3, %p619_p0 }
  0xf5   :  { %v579_v23 = vpop.f32.mrb[0].mxu0 }
  0xf6   :  { %v161_v24 = vadd.f32 %v579_v23, %v494_v21  ;;  %v152_v25 = vpop.f32.mrb[1].mxu0 }
  0xf7   :  { %v153_v26 = vadd.f32 %v494_v21, %v152_v25  ;;  %v580_v27 = vpop.f32.mrb[2].mxu0 }
  0xf8   :  { %v179_v28 = vsel %vm175_vm1, %v161_v24, -inf  ;;  %v164_v29 = vadd.f32 %v580_v27, %v494_v21  ;;  %v155_v30 = vpop.f32.mrb[3].mxu0 }
  0xf9   :  { %v183_v31 = vmax.f32 %v179_v28, 0.0  ;;  %v177_v32 = vsel %vm175_vm1, %v153_v26, -inf  ;;  %v156_v33 = vadd.f32 %v494_v21, %v155_v30 }
  0xfa   :  { %v181_v34 = vmax.f32 %v177_v32, 0.0  ;;  %v180_v35 = vsel %vm176_vm2, %v164_v29, -inf }
  0xfb   :  { %v184_v36 = vmax.f32 %v180_v35, 0.0  ;;  %v178_v37 = vsel %vm176_vm2, %v156_v33, -inf  ;;  %v195_v39 = vsel %vm185_vm3, %v183_v31, -inf  ;;  %v512_v31 = vld [vmem:[%s818_s7] ss:$0 sm:$0xff] }
  0xfc   :  { %v182_v38 = vmax.f32 %v178_v37, 0.0  ;;  %v186_v41 = vsel %vm185_vm3, %v181_v34, -inf }
  0xfd   :  { %v196_v40 = vsel %vm185_vm3, %v184_v36, -inf }
  0xfe   :  { %v197_v42 = vmax.f32 %v195_v39, %v196_v40  ;;  %v187_v43 = vsel %vm185_vm3, %v182_v38, -inf }
  0xff   :  { %v188_v44 = vmax.f32 %v186_v41, %v187_v43 }
 0x100   :  { %v198_v45 = vrot.slane %v197_v42, 4 }
 0x101   :  { %v189_v46 = vrot.slane %v188_v44, 4 }
 0x102   :  { %v199_v47 = vmax.f32 %v197_v42, %v198_v45 }
 0x103   :  { %v190_v48 = vmax.f32 %v188_v44, %v189_v46 }
 0x104   :  { %v200_v49 = vrot.slane %v199_v47, 2 }
 0x105   :  { %v191_v50 = vrot.slane %v190_v48, 2 }
 0x106   :  { %v201_v51 = vmax.f32 %v199_v47, %v200_v49 }
 0x107   :  { %v192_v52 = vmax.f32 %v190_v48, %v191_v50 }
 0x108   :  { %v202_v53 = vrot.slane %v201_v51, 1 }
 0x109   :  { %v193_v54 = vrot.slane %v192_v52, 1 }
 0x10a   :  { %v203_v55 = vmax.f32 %v201_v51, %v202_v53 }
 0x10b   :  { %v194_v56 = vmax.f32 %v192_v52, %v193_v54 }
 0x10c   :  { %v205_v57 = vpack.c.bf16 %v203_v55, %v203_v55 }
 0x10d   :  { %v204_v58 = vpack.c.bf16 %v194_v56, %v194_v56 }
 0x10e   :  { %v224_v59 = vunpack.c.l.b16 %v205_v57 }
 0x10f   :  { %v223_v60 = vunpack.c.l.b16 %v204_v58 }
 0x111   :  { %v226_v61 = vsel %vm225_vm4, %v224_v59, %v223_v60 }
 0x112   :  { %v227_v63 = vpack.c.b16 %v226_v61, %v226_v61 }
 0x114   :  { %511 = vmatmul.mubr.msk.bf16.vlgmr.msra.gmra.mrb[0].mxu1 %vm185_vm3, %v227_v63 }
 0x115   :  { %540 = vmatpush3.bf16.msra.mxu1 %v599_v62 }
 0x116   :  { %541 = vmatprep.subr.bf16.mxu1 %v600_v0 }
 0x119   :  { %542 = vmatpush3.bf16.msra.mxu1 %v601_v1 }
 0x11a   :  { %543 = vmatprep.subr.bf16.mxu1 %v602_v2 }
 0x11d   :  { %544 = vmatpush3.bf16.msra.mxu1 %v603_v3 }
 0x11e   :  { %545 = vmatprep.subr.bf16.mxu1 %v604_v4 }
 0x121   :  { %546 = vmatpush3.bf16.msra.mxu1 %v605_v5 }
 0x122   :  { %547 = vmatprep.subr.bf16.mxu1 %v606_v6 }
 0x125   :  { %548 = vmatpush3.bf16.msra.mxu1 %v607_v7 }
 0x126   :  { %549 = vmatprep.subr.bf16.mxu1 %v608_v8 }
 0x129   :  { %550 = vmatpush3.bf16.msra.mxu1 %v609_v9 }
 0x12a   :  { %551 = vmatprep.subr.bf16.mxu1 %v610_v10 }
 0x12d   :  { %552 = vmatpush3.bf16.msra.mxu1 %v611_v11 }
 0x12e   :  { %553 = vmatprep.subr.bf16.mxu1 %v612_v12 }
 0x131   :  { %554 = vmatpush3.bf16.msra.mxu1 %v613_v13 }
 0x1e7   :  { %v287_v20 = vpop.f32.mrb[0].mxu1 }
 0x1e8   :  { %v288_v21 = vadd.f32 %v287_v20, %v214_v17  ;;  %v289_v22 = vpop.f32.mrb[1].mxu1 }
 0x1e9   :  { %v290_v23 = vadd.f32 %v289_v22, %v218_v18  ;;  %v291_v24 = vpop.f32.mrb[2].mxu1 }
 0x1ea   :  { %v294_v25 = vmax.f32 %v288_v21, 0.0  ;;  %v292_v26 = vpop.f32.mrb[3].mxu1 }
 0x1eb   :  { %v295_v27 = vmax.f32 %v290_v23, 0.0 }
 0x1ec   :  { %v296_v29 = vpack.c.bf16 %v294_v25, %v294_v25 }
 0x1ed   :  { %v297_v28 = vpack.c.bf16 %v295_v27, %v295_v27 }
 0x1ef   :  { %465 = vmatprep.mubr.bf16.mxu1 %v297_v28 }
 0x1f0   :  { %466 = vmatmul.mubr.bf16.vlgmr.msra.gmra.mrb[4].mxu1 %v296_v29 }
 0x2c3   :  { %v555_v30 = vpop.f32.mrb[4].mxu1 }
 0x2c4   :  { %v556_v19 = vpop.f32.mrb[5].mxu1 }
 0x2c5   :  { %v557_v32 = vadd.f32 %v556_v19, %v555_v30  ;;  %v558_v33 = vpop.f32.mrb[6].mxu1 }
 0x2c6   :  { %v559_v34 = vpop.f32.mrb[7].mxu1 }
 0x2c7   :  { %v468_v35 = vadd.f32 %v557_v32, %v512_v31 }
 0x2c9   :  { %v473_v36 = vsub.f32 0.0, %v468_v35 }
 0x2cb   :  { %v474_v37 = vmul.f32 1.442695, %v473_v36 }
 0x2cd   :  { %614 = vpow2.f32 %v474_v37 }
 0x2d7   :  { %v615_v38 = vpop.eup %614 }
 0x2d8   :  { %v476_v39 = vadd.f32 1.0, %v615_v38 }
 0x2da   :  { %616 = vrcp.f32 %v476_v39 }
 0x2e4   :  { %v617_v40 = vpop.eup %616 }
 0x2e5   :  { %479 = vst.msk [vmem:[#allocation2] sm:$0x3] %vm478_vm5, %v617_v40 }
 0x2e6   :  { %629 = shalt.err (!%p626_p4)
}
 0x2e7   :  { %s630_s19 = scalar_lea.hbm %s819_s8, 32 }
 0x2e8   :  { %p631_p5 = scmp.ne.s32.totalorder %s819_s8, %s630_s19  ;;  %p634_p6 = scmp.lt.u32.totalorder %s630_s19, %s819_s8 }
 0x2ea   :  { %p636_p7 = pnand %p634_p6, %p631_p5 }
 0x2ec   :  { %639 = shalt.err (!%p636_p7)
}
 0x2ed   :  { %489 = dma.vmem_to_hbm [thread:$0]  %s487_s16, 32, %s819_s8, [#allocation3]  }
 0x2ee   :  { %640 = dma.done.wait [#allocation3], 32  }
 0x2ef   :  { %641 = vsyncadd [#allocation3], 4294967264 }
 0x2f0   :  { %493 = vsyncpa [#allocation3], 1 }

</bundles_post_ra>
